<compile_context>
chip_gen: v7x
topology: tpu7x:2x2x1
jax: 0.10.0
libtpu: 0.0.40
codegen_flags: <defaults>
</compile_context>

<pallas_src>
import jax
import jax.numpy as jnp
import numpy as np
from jax.experimental import pallas as pl
from jax.experimental.pallas import tpu as pltpu


def _interp_matrix(out_size: int, in_size: int) -> np.ndarray:
    """Bilinear interpolation matrix, PyTorch align_corners=False semantics."""
    scale = in_size / out_size
    dst = np.arange(out_size, dtype=np.float64)
    src = (dst + 0.5) * scale - 0.5
    src = np.maximum(src, 0.0)  # PyTorch clamps negative source coords for bilinear
    i0 = np.floor(src).astype(np.int64)
    frac = src - i0
    i0c = np.clip(i0, 0, in_size - 1)
    i1c = np.clip(i0 + 1, 0, in_size - 1)
    m = np.zeros((out_size, in_size), dtype=np.float32)
    rows = np.arange(out_size)
    np.add.at(m, (rows, i0c), (1.0 - frac).astype(np.float32))
    np.add.at(m, (rows, i1c), frac.astype(np.float32))
    return m


def _resize_kernel(x_ref, w_ref, o_ref):
    # x_ref: (TB, H*W) uint8 ; w_ref: (H*W, S*S) f32 (1/255 folded in) ; o_ref: (TB, S*S) f32
    x = x_ref[...].astype(jnp.float32)  # in-kernel cast: HBM input stays 1 B/elem
    o_ref[...] = jnp.dot(x, w_ref[...], preferred_element_type=jnp.float32)


# Conservative VMEM budget that fits the default scoped limit on v5e/v6e/v7x.
_VMEM_BUDGET = 24 * 1024 * 1024


def preprocess(x, input_size: int = 32):
    """x: (B, C, H, W) images (e.g. uint8). Returns float32 (B, C, S, S)."""
    B, C, H, W = x.shape
    S = input_size
    N, HW, SS = B * C, H * W, S * S

    # Bilinear weights with the 1/255 scale folded in; Kronecker form so the whole
    # resize is a single lane-dense matmul.
    ah = _interp_matrix(S, H) * np.float32(1.0 / 255.0)   # (S, H), scale folded
    aw = _interp_matrix(S, W)                             # (S, W)
    wk = jnp.asarray(np.kron(ah, aw).T.astype(np.float32))  # (H*W, S*S)
    # TODO(synk): for large images (H*W*S*S*4 >> VMEM) switch to a separable
    # two-matmul path instead of the Kronecker weight.

    # Plane-batch size TB per grid step.
    if N < 32:
        tb = N  # block spans the whole plane axis (any size allowed)
    else:
        # Multiple of 32 (native 8-bit sublane tile), capped by the VMEM budget and
        # sized so the grid has >=2 steps (keeps both v7x TensorCores busy).
        per_plane = HW + 4 * SS                                   # u8 in + f32 out, per buffer
        tb_mem = max(32, ((_VMEM_BUDGET // (2 * per_plane)) // 32) * 32)
        tb = min(256, tb_mem, max(32, ((N // 2) // 32) * 32))
    grid = pl.cdiv(N, tb)

    x_flat = x.reshape(N, HW)  # keep original (uint8) dtype; cast happens in-kernel

    out = pl.pallas_call(
        _resize_kernel,
        out_shape=jax.ShapeDtypeStruct((N, SS), jnp.float32),
        grid=(grid,),
        in_specs=[
            pl.BlockSpec((tb, HW), lambda i: (i, 0)),   # uint8 planes, lane-dense
            pl.BlockSpec((HW, SS), lambda i: (0, 0)),   # grid-invariant weight
        ],
        out_specs=pl.BlockSpec((tb, SS), lambda i: (i, 0)),  # lane-dense (S*S >= 128) stores
        compiler_params=pltpu.CompilerParams(dimension_semantics=("parallel",)),
    )(x_flat, wk)
    return out.reshape(B, C, S, S)


def _reference(x, input_size: int = 32):
    """Pure-JAX reference: (x/255) resized with the same interpolation matrices."""
    B, C, H, W = x.shape
    ah = jnp.asarray(_interp_matrix(input_size, H))
    aw = jnp.asarray(_interp_matrix(input_size, W))
    xf = x.astype(jnp.float32) / 255.0
    return jnp.einsum("oh,bchw,pw->bcop", ah, xf, aw)


if __name__ == "__main__":
    key = jax.random.PRNGKey(0)
    x = jax.random.randint(key, (2, 4, 16, 16), 0, 256, dtype=jnp.int32).astype(jnp.uint8)

    y = preprocess(x, input_size=32)
    y = jax.block_until_ready(y)

    y_ref = _reference(x, input_size=32)
    assert y.shape == (2, 4, 32, 32) and y.dtype == jnp.float32
    np.testing.assert_allclose(np.asarray(y), np.asarray(y_ref), rtol=1e-5, atol=1e-5)

    print("KERNEL_OK")
</pallas_src>

<mosaic_0001>
module attributes {stable_mosaic.version = 11 : i64} {
  func.func @_resize_kernel(%arg0: i32, %arg1: memref<8x256xi8, #tpu.memory_space<vmem>>, %arg2: memref<256x1024xf32, #tpu.memory_space<vmem>>, %arg3: memref<8x1024xf32, #tpu.memory_space<vmem>>) attributes {dimension_semantics = [#tpu.dimension_semantics<parallel>], iteration_bounds = array<i64: 1>, scalar_prefetch = 0 : i64, scratch_operands = 0 : i64, tpu.core_type = #tpu.core_type<tc>, window_params = [{transform_indices = @transform_0, window_bounds = array<i64: 8, 256>}, {pipeline_mode = #tpu.pipeline_mode<synchronous>, transform_indices = @transform_1, window_bounds = array<i64: 256, 1024>}, {transform_indices = @transform_2, window_bounds = array<i64: 8, 1024>}]} {
    %c0 = arith.constant 0 : index
    %c0_0 = arith.constant 0 : index
    %0 = vector.load %arg1[%c0, %c0_0] : memref<8x256xi8, #tpu.memory_space<vmem>>, vector<8x256xi8>
    %1 = arith.uitofp %0 : vector<8x256xi8> to vector<8x256xf32>
    %c0_1 = arith.constant 0 : index
    %c0_2 = arith.constant 0 : index
    %2 = vector.load %arg2[%c0_1, %c0_2] : memref<256x1024xf32, #tpu.memory_space<vmem>>, vector<256x1024xf32>
    %cst = arith.constant dense<0.000000e+00> : vector<8x1024xf32>
    %3 = tpu.matmul %1, %2, %cst {dimension_numbers = #tpu.dot_dimension_numbers<[1], [0], [0], [1], [0, 0, 1, 1], [], []>} : vector<8x256xf32>, vector<256x1024xf32>, vector<8x1024xf32> -> vector<8x1024xf32>
    %c0_3 = arith.constant 0 : index
    %c0_4 = arith.constant 0 : index
    %4 = vector.load %arg3[%c0_3, %c0_4] : memref<8x1024xf32, #tpu.memory_space<vmem>>, vector<8x1024xf32>
    tpu.vector_store %arg3[%c0_3, %c0_4], %3 {strides = array<i32>} : memref<8x1024xf32, #tpu.memory_space<vmem>>, vector<8x1024xf32>,
    return
  }
  func.func @transform_0(%arg0: i32) -> (i32, i32) {
    %c0_i32 = arith.constant 0 : i32
    %c0_i32_0 = arith.constant 0 : i32
    return %arg0, %c0_i32 : i32, i32
  }
  func.func @transform_1(%arg0: i32) -> (i32, i32) {
    %c0_i32 = arith.constant 0 : i32
    %c0_i32_0 = arith.constant 0 : i32
    %c0_i32_1 = arith.constant 0 : i32
    return %c0_i32, %c0_i32_0 : i32, i32
  }
  func.func @transform_2(%arg0: i32) -> (i32, i32) {
    %c0_i32 = arith.constant 0 : i32
    %c0_i32_0 = arith.constant 0 : i32
    return %arg0, %c0_i32 : i32, i32
  }
}

</mosaic_0001>

<bundles_post_ra>
// kernel: tpu_custom_call.1
= control target key start
LH: loop header
LB: loop body
LE: loop exit
PB: predicated region body
PF: predicated region fallthrough
CT: control target
= control target key end

     0   :  { %7 = vsyncpa [#allocation3], 0  ;;  %s1021_s0 = inlined_call_operand.hbm [shape: u8[8,256], index: 0, kind: input, shape index: {}]   ;;  %s1022_s1 = inlined_call_operand.hbm [shape: f32[256,1024], index: 1, kind: input, shape index: {}]   ;;  %s1023_s2 = inlined_call_operand.hbm [shape: f32[8,1024], index: 2, kind: output, shape index: {}]  }
   0x1   :  { %8 = vsyncpa [#allocation6], 0 }
   0x2   :  { %9 = vsyncpa [#allocation4], 0  ;;  %s942_s9 = smov [#allocation2]   ;;  %s943_s11 = smov [#allocation5]  }
   0x3   :  { %s16_s10 = sshll.u32 %s942_s9, 4  ;;  %s25_s12 = sshll.u32 %s943_s11, 4  ;;  %s17_s10 = int_to_ptr.vmem [resolvable:$true] %s16_s10  ;;  %s962_s12 = int_to_ptr.vmem [resolvable:$true] %s25_s12 }
   0x4   :  { %s870_s15 = scalar_lea.hbm %s1021_s0, 64 }
   0x5   :  { %p871_p0 = scmp.ne.s32.totalorder %s1021_s0, %s870_s15  ;;  %p874_p1 = scmp.lt.u32.totalorder %s870_s15, %s1021_s0 }
   0x7   :  { %p876_p2 = pnand %p874_p1, %p871_p0 }
   0x9   :  { %879 = shalt.err (!%p876_p2)
}
   0xa   :  { %s880_s20 = scalar_lea.vmem %s17_s10, 64  ;;  %p885_p4 = scmp.lt.s32.totalorder %s17_s10, %s17_s10 }
   0xb   :  { %p881_p3 = scmp.ne.s32.totalorder %s17_s10, %s880_s20  ;;  %p886_p5 = scmp.lt.s32.totalorder %s880_s20, %s880_s20 }
   0xd   :  { %p887_p6 = por %p886_p5, %p885_p4 }
   0xf   :  { %p888_p7 = pnand %p887_p6, %p881_p3 }
  0x11   :  { %891 = shalt.err (!%p888_p7)
}
  0x12   :  { %19 = dma.hbm_to_vmem [thread:$0]  %s1021_s0, 64, %s17_s10, [#allocation3]  }
  0x13   :  { %s892_s25 = scalar_lea.hbm %s1022_s1, 32768 }
  0x14   :  { %p893_p8 = scmp.ne.s32.totalorder %s1022_s1, %s892_s25  ;;  %p896_p9 = scmp.lt.u32.totalorder %s892_s25, %s1022_s1 }
  0x16   :  { %p898_p10 = pnand %p896_p9, %p893_p8 }
  0x18   :  { %901 = shalt.err (!%p898_p10)
}
  0x19   :  { %s902_s30 = scalar_lea.vmem %s962_s12, 32768  ;;  %p907_p12 = scmp.lt.s32.totalorder %s962_s12, %s962_s12 }
  0x1a   :  { %p903_p11 = scmp.ne.s32.totalorder %s962_s12, %s902_s30  ;;  %p908_p13 = scmp.lt.s32.totalorder %s902_s30, %s902_s30 }
  0x1c   :  { %p909_p0 = por %p908_p13, %p907_p12 }
  0x1e   :  { %p910_p1 = pnand %p909_p0, %p903_p11 }
  0x20   :  { %913 = shalt.err (!%p910_p1)
}
  0x21   :  { %s944_s0 = smov 1024   ;;  %s945_s3 = smov 64  }
  0x22   :  { %31 = dma.hbm_to_vmem [thread:$0]  %s1022_s1, 32768, %s962_s12, [#allocation6], %s944_s0, %s944_s0, %s945_s3  }
  0x23   :  { %936 = dma.done.wait [#allocation3], 64  }
  0x24   :  { %937 = vsyncadd [#allocation3], 4294967232 }
  0x25   :  { %938 = dma.done.wait [#allocation6], 32768  }
  0x26   :  { %939 = vsyncadd [#allocation6], 4294934528  ;;  %v46_v0 = vld [vmem:[#allocation5 + $0x8] sm:$0xff]  ;;  %v48_v2 = vld [vmem:[#allocation5 + $0x18] sm:$0xff]  ;;  %s946_s1 = smov [#allocation7]  }
  0x27   :  { %v54_v1 = vld [vmem:[#allocation5 + $0x48] sm:$0xff]  ;;  %v56_v4 = vld [vmem:[#allocation5 + $0x58] sm:$0xff]  ;;  %v45_v5 = vld [vmem:[#allocation5] sm:$0xff]  ;;  %s599_s6 = sshll.u32 %s946_s1, 4  ;;  %s600_s6 = int_to_ptr.vmem [resolvable:$true] %s599_s6 }
  0x28   :  { %v609_v3 = vpack.c.bf16 %v54_v1, %v46_v0  ;;  %v53_v6 = vld [vmem:[#allocation5 + $0x40] sm:$0xff]  ;;  %v673_v7 = vpack.c.bf16 %v56_v4, %v48_v2  ;;  %v47_v9 = vld [vmem:[#allocation5 + $0x10] sm:$0xff]  ;;  %v62_v11 = vld [vmem:[#allocation5 + $0x88] sm:$0xff]  ;;  %s914_s7 = scalar_lea.vmem %s600_s6, 1024  ;;  %p919_p3 = scmp.lt.s32.totalorder %s600_s6, %s600_s6 }
  0x29   :  { %v611_v8 = vpack.c.bf16 %v53_v6, %v45_v5  ;;  %v55_v10 = vld [vmem:[#allocation5 + $0x50] sm:$0xff]  ;;  %v70_v13 = vld [vmem:[#allocation5 + $0xc8] sm:$0xff]  ;;  %v64_v14 = vld [vmem:[#allocation5 + $0x98] sm:$0xff]  ;;  %p915_p2 = scmp.ne.s32.totalorder %s600_s6, %s914_s7  ;;  %p920_p4 = scmp.lt.s32.totalorder %s914_s7, %s914_s7 }
  0x2a   :  { %610 = vmatprep.subr.bf16.mxu0 %v609_v3  ;;  %v675_v12 = vpack.c.bf16 %v55_v10, %v47_v9  ;;  %v72_v15 = vld [vmem:[#allocation5 + $0xd8] sm:$0xff]  ;;  %674 = vmatprep.subr.bf16.mxu1 %v673_v7  ;;  %v613_v16 = vpack.c.bf16 %v70_v13, %v62_v11  ;;  %v61_v18 = vld [vmem:[#allocation5 + $0x80] sm:$0xff]  ;;  %v63_v20 = vld [vmem:[#allocation5 + $0x90] sm:$0xff] }
  0x2b   :  { %612 = vmatpush1.bf16.msra.mxu0 %v611_v8  ;;  %v677_v17 = vpack.c.bf16 %v72_v15, %v64_v14  ;;  %v69_v19 = vld [vmem:[#allocation5 + $0xc0] sm:$0xff]  ;;  %v71_v22 = vld [vmem:[#allocation5 + $0xd0] sm:$0xff]  ;;  %v78_v23 = vld [vmem:[#allocation5 + $0x108] sm:$0xff]  ;;  %p921_p5 = por %p920_p4, %p919_p3 }
  0x2c   :  { %676 = vmatpush1.bf16.msra.mxu1 %v675_v12  ;;  %v615_v21 = vpack.c.bf16 %v69_v19, %v61_v18  ;;  %v86_v24 = vld [vmem:[#allocation5 + $0x148] sm:$0xff]  ;;  %614 = vmatprep.subr.bf16.mxu0 %v613_v16  ;;  %v679_v25 = vpack.c.bf16 %v71_v22, %v63_v20  ;;  %v80_v27 = vld [vmem:[#allocation5 + $0x118] sm:$0xff]  ;;  %v77_v29 = vld [vmem:[#allocation5 + $0x100] sm:$0xff] }
  0x2d   :  { %678 = vmatprep.subr.bf16.mxu1 %v677_v17  ;;  %v617_v26 = vpack.c.bf16 %v86_v24, %v78_v23  ;;  %v88_v28 = vld [vmem:[#allocation5 + $0x158] sm:$0xff]  ;;  %v85_v31 = vld [vmem:[#allocation5 + $0x140] sm:$0xff]  ;;  %v79_v32 = vld [vmem:[#allocation5 + $0x110] sm:$0xff]  ;;  %p922_p6 = pnand %p921_p5, %p915_p2 }
  0x2e   :  { %v681_v30 = vpack.c.bf16 %v88_v28, %v80_v27  ;;  %v87_v33 = vld [vmem:[#allocation5 + $0x150] sm:$0xff]  ;;  %v619_v34 = vpack.c.bf16 %v85_v31, %v77_v29  ;;  %v94_v35 = vld [vmem:[#allocation5 + $0x188] sm:$0xff]  ;;  %v96_v37 = vld [vmem:[#allocation5 + $0x198] sm:$0xff] }
  0x2f   :  { %616 = vmatpush1.bf16.msra.mxu0 %v615_v21  ;;  %v102_v36 = vld [vmem:[#allocation5 + $0x1c8] sm:$0xff]  ;;  %v683_v38 = vpack.c.bf16 %v87_v33, %v79_v32  ;;  %v104_v40 = vld [vmem:[#allocation5 + $0x1d8] sm:$0xff]  ;;  %v93_v41 = vld [vmem:[#allocation5 + $0x180] sm:$0xff] }
  0x30   :  { %680 = vmatpush1.bf16.msra.mxu1 %v679_v25  ;;  %618 = vmatprep.subr.bf16.mxu0 %v617_v26  ;;  %v621_v39 = vpack.c.bf16 %v102_v36, %v94_v35  ;;  %v101_v42 = vld [vmem:[#allocation5 + $0x1c0] sm:$0xff]  ;;  %v685_v43 = vpack.c.bf16 %v104_v40, %v96_v37  ;;  %v95_v44 = vld [vmem:[#allocation5 + $0x190] sm:$0xff]  ;;  %v110_v46 = vld [vmem:[#allocation5 + $0x208] sm:$0xff] }
  0x31   :  { %682 = vmatprep.subr.bf16.mxu1 %v681_v30  ;;  %v103_v45 = vld [vmem:[#allocation5 + $0x1d0] sm:$0xff]  ;;  %v118_v47 = vld [vmem:[#allocation5 + $0x248] sm:$0xff]  ;;  %v112_v48 = vld [vmem:[#allocation5 + $0x218] sm:$0xff]  ;;  %v623_v50 = vpack.c.bf16 %v101_v42, %v93_v41 }
  0x32   :  { %v120_v49 = vld [vmem:[#allocation5 + $0x258] sm:$0xff]  ;;  %v687_v51 = vpack.c.bf16 %v103_v45, %v95_v44  ;;  %v625_v52 = vpack.c.bf16 %v118_v47, %v110_v46  ;;  %v109_v53 = vld [vmem:[#allocation5 + $0x200] sm:$0xff]  ;;  %v111_v55 = vld [vmem:[#allocation5 + $0x210] sm:$0xff] }
  0x33   :  { %620 = vmatpush1.bf16.msra.mxu0 %v619_v34  ;;  %v117_v54 = vld [vmem:[#allocation5 + $0x240] sm:$0xff]  ;;  %v689_v56 = vpack.c.bf16 %v120_v49, %v112_v48  ;;  %v119_v57 = vld [vmem:[#allocation5 + $0x250] sm:$0xff]  ;;  %v126_v58 = vld [vmem:[#allocation5 + $0x288] sm:$0xff] }
  0x34   :  { %684 = vmatpush1.bf16.msra.mxu1 %v683_v38  ;;  %622 = vmatprep.subr.bf16.mxu0 %v621_v39  ;;  %v134_v59 = vld [vmem:[#allocation5 + $0x2c8] sm:$0xff]  ;;  %v128_v60 = vld [vmem:[#allocation5 + $0x298] sm:$0xff]  ;;  %v627_v62 = vpack.c.bf16 %v117_v54, %v109_v53  ;;  %v691_v63 = vpack.c.bf16 %v119_v57, %v111_v55  ;;  %v125_v1 = vld [vmem:[#allocation5 + $0x280] sm:$0xff] }
  0x35   :  { %686 = vmatprep.subr.bf16.mxu1 %v685_v43  ;;  %v136_v61 = vld [vmem:[#allocation5 + $0x2d8] sm:$0xff]  ;;  %v629_v0 = vpack.c.bf16 %v134_v59, %v126_v58  ;;  %v133_v2 = vld [vmem:[#allocation5 + $0x2c0] sm:$0xff]  ;;  %v127_v3 = vld [vmem:[#allocation5 + $0x290] sm:$0xff] }
  0x36   :  { %v693_v4 = vpack.c.bf16 %v136_v61, %v128_v60  ;;  %v135_v5 = vld [vmem:[#allocation5 + $0x2d0] sm:$0xff]  ;;  %v142_v6 = vld [vmem:[#allocation5 + $0x308] sm:$0xff]  ;;  %v144_v8 = vld [vmem:[#allocation5 + $0x318] sm:$0xff]  ;;  %v631_v10 = vpack.c.bf16 %v133_v2, %v125_v1 }
  0x37   :  { %624 = vmatpush1.bf16.msra.mxu0 %v623_v50  ;;  %v150_v7 = vld [vmem:[#allocation5 + $0x348] sm:$0xff]  ;;  %v152_v9 = vld [vmem:[#allocation5 + $0x358] sm:$0xff]  ;;  %v695_v11 = vpack.c.bf16 %v135_v5, %v127_v3  ;;  %v141_v13 = vld [vmem:[#allocation5 + $0x300] sm:$0xff] }
  0x38   :  { %688 = vmatpush1.bf16.msra.mxu1 %v687_v51  ;;  %626 = vmatprep.subr.bf16.mxu0 %v625_v52  ;;  %v633_v12 = vpack.c.bf16 %v150_v7, %v142_v6  ;;  %v149_v14 = vld [vmem:[#allocation5 + $0x340] sm:$0xff]  ;;  %v143_v15 = vld [vmem:[#allocation5 + $0x310] sm:$0xff]  ;;  %v697_v16 = vpack.c.bf16 %v152_v9, %v144_v8  ;;  %v158_v18 = vld [vmem:[#allocation5 + $0x388] sm:$0xff] }
  0x39   :  { %690 = vmatprep.subr.bf16.mxu1 %v689_v56  ;;  %v151_v17 = vld [vmem:[#allocation5 + $0x350] sm:$0xff]  ;;  %v166_v19 = vld [vmem:[#allocation5 + $0x3c8] sm:$0xff]  ;;  %v160_v20 = vld [vmem:[#allocation5 + $0x398] sm:$0xff]  ;;  %v635_v22 = vpack.c.bf16 %v149_v14, %v141_v13 }
  0x3a   :  { %v168_v21 = vld [vmem:[#allocation5 + $0x3d8] sm:$0xff]  ;;  %v699_v23 = vpack.c.bf16 %v151_v17, %v143_v15  ;;  %v637_v24 = vpack.c.bf16 %v166_v19, %v158_v18  ;;  %v157_v25 = vld [vmem:[#allocation5 + $0x380] sm:$0xff]  ;;  %v159_v27 = vld [vmem:[#allocation5 + $0x390] sm:$0xff] }
  0x3b   :  { %628 = vmatpush1.bf16.msra.mxu0 %v627_v62  ;;  %v165_v26 = vld [vmem:[#allocation5 + $0x3c0] sm:$0xff]  ;;  %v701_v28 = vpack.c.bf16 %v168_v21, %v160_v20  ;;  %v167_v29 = vld [vmem:[#allocation5 + $0x3d0] sm:$0xff]  ;;  %v174_v30 = vld [vmem:[#allocation5 + $0x408] sm:$0xff] }
  0x3c   :  { %692 = vmatpush1.bf16.msra.mxu1 %v691_v63  ;;  %630 = vmatprep.subr.bf16.mxu0 %v629_v0  ;;  %v182_v31 = vld [vmem:[#allocation5 + $0x448] sm:$0xff]  ;;  %v176_v32 = vld [vmem:[#allocation5 + $0x418] sm:$0xff]  ;;  %v639_v34 = vpack.c.bf16 %v165_v26, %v157_v25  ;;  %v703_v35 = vpack.c.bf16 %v167_v29, %v159_v27  ;;  %v173_v37 = vld [vmem:[#allocation5 + $0x400] sm:$0xff] }
  0x3d   :  { %694 = vmatprep.subr.bf16.mxu1 %v693_v4  ;;  %v184_v33 = vld [vmem:[#allocation5 + $0x458] sm:$0xff]  ;;  %v641_v36 = vpack.c.bf16 %v182_v31, %v174_v30  ;;  %v181_v38 = vld [vmem:[#allocation5 + $0x440] sm:$0xff]  ;;  %v175_v39 = vld [vmem:[#allocation5 + $0x410] sm:$0xff] }
  0x3e   :  { %v705_v40 = vpack.c.bf16 %v184_v33, %v176_v32  ;;  %v183_v41 = vld [vmem:[#allocation5 + $0x450] sm:$0xff]  ;;  %v190_v42 = vld [vmem:[#allocation5 + $0x488] sm:$0xff]  ;;  %v192_v44 = vld [vmem:[#allocation5 + $0x498] sm:$0xff]  ;;  %v643_v46 = vpack.c.bf16 %v181_v38, %v173_v37 }
  0x3f   :  { %632 = vmatpush1.bf16.msra.mxu0 %v631_v10  ;;  %v198_v43 = vld [vmem:[#allocation5 + $0x4c8] sm:$0xff]  ;;  %v200_v45 = vld [vmem:[#allocation5 + $0x4d8] sm:$0xff]  ;;  %v707_v47 = vpack.c.bf16 %v183_v41, %v175_v39  ;;  %v189_v49 = vld [vmem:[#allocation5 + $0x480] sm:$0xff] }
  0x40   :  { %696 = vmatpush1.bf16.msra.mxu1 %v695_v11  ;;  %634 = vmatprep.subr.bf16.mxu0 %v633_v12  ;;  %v645_v48 = vpack.c.bf16 %v198_v43, %v190_v42  ;;  %v197_v50 = vld [vmem:[#allocation5 + $0x4c0] sm:$0xff]  ;;  %v191_v51 = vld [vmem:[#allocation5 + $0x490] sm:$0xff]  ;;  %v709_v52 = vpack.c.bf16 %v200_v45, %v192_v44  ;;  %v206_v54 = vld [vmem:[#allocation5 + $0x508] sm:$0xff] }
  0x41   :  { %698 = vmatprep.subr.bf16.mxu1 %v697_v16  ;;  %v199_v53 = vld [vmem:[#allocation5 + $0x4d0] sm:$0xff]  ;;  %v214_v55 = vld [vmem:[#allocation5 + $0x548] sm:$0xff]  ;;  %v208_v56 = vld [vmem:[#allocation5 + $0x518] sm:$0xff]  ;;  %v647_v58 = vpack.c.bf16 %v197_v50, %v189_v49 }
  0x42   :  { %v216_v57 = vld [vmem:[#allocation5 + $0x558] sm:$0xff]  ;;  %v711_v59 = vpack.c.bf16 %v199_v53, %v191_v51  ;;  %v649_v60 = vpack.c.bf16 %v214_v55, %v206_v54  ;;  %v205_v61 = vld [vmem:[#allocation5 + $0x500] sm:$0xff]  ;;  %v207_v63 = vld [vmem:[#allocation5 + $0x510] sm:$0xff] }
  0x43   :  { %636 = vmatpush1.bf16.msra.mxu0 %v635_v22  ;;  %v213_v62 = vld [vmem:[#allocation5 + $0x540] sm:$0xff]  ;;  %v713_v0 = vpack.c.bf16 %v216_v57, %v208_v56  ;;  %v215_v1 = vld [vmem:[#allocation5 + $0x550] sm:$0xff]  ;;  %v222_v2 = vld [vmem:[#allocation5 + $0x588] sm:$0xff] }
  0x44   :  { %700 = vmatpush1.bf16.msra.mxu1 %v699_v23  ;;  %638 = vmatprep.subr.bf16.mxu0 %v637_v24  ;;  %v230_v3 = vld [vmem:[#allocation5 + $0x5c8] sm:$0xff]  ;;  %v224_v4 = vld [vmem:[#allocation5 + $0x598] sm:$0xff]  ;;  %v651_v6 = vpack.c.bf16 %v213_v62, %v205_v61  ;;  %v221_v7 = vld [vmem:[#allocation5 + $0x580] sm:$0xff]  ;;  %v715_v8 = vpack.c.bf16 %v215_v1, %v207_v63 }
  0x45   :  { %702 = vmatprep.subr.bf16.mxu1 %v701_v28  ;;  %v232_v5 = vld [vmem:[#allocation5 + $0x5d8] sm:$0xff]  ;;  %v653_v9 = vpack.c.bf16 %v230_v3, %v222_v2  ;;  %v229_v10 = vld [vmem:[#allocation5 + $0x5c0] sm:$0xff]  ;;  %v223_v11 = vld [vmem:[#allocation5 + $0x590] sm:$0xff] }
  0x46   :  { %v231_v12 = vld [vmem:[#allocation5 + $0x5d0] sm:$0xff]  ;;  %v717_v13 = vpack.c.bf16 %v232_v5, %v224_v4  ;;  %v238_v14 = vld [vmem:[#allocation5 + $0x608] sm:$0xff]  ;;  %v993_v16 = vld [vmem:[#allocation2] sm:$0xf]  ;;  %v655_v20 = vpack.c.bf16 %v229_v10, %v221_v7 }
  0x47   :  { %640 = vmatpush1.bf16.msra.mxu0 %v639_v34  ;;  %v246_v15 = vld [vmem:[#allocation5 + $0x648] sm:$0xff]  ;;  %v240_v17 = vld [vmem:[#allocation5 + $0x618] sm:$0xff]  ;;  %v40_v19 = vunpack.c.1.s8 %v993_v16  ;;  %v719_v21 = vpack.c.bf16 %v231_v12, %v223_v11  ;;  %v237_v23 = vld [vmem:[#allocation5 + $0x600] sm:$0xff] }
  0x48   :  { %704 = vmatpush1.bf16.msra.mxu1 %v703_v35  ;;  %642 = vmatprep.subr.bf16.mxu0 %v641_v36  ;;  %v248_v18 = vld [vmem:[#allocation5 + $0x658] sm:$0xff]  ;;  %v657_v22 = vpack.c.bf16 %v246_v15, %v238_v14  ;;  %v245_v24 = vld [vmem:[#allocation5 + $0x640] sm:$0xff]  ;;  %v239_v25 = vld [vmem:[#allocation5 + $0x610] sm:$0xff] }
  0x49   :  { %706 = vmatprep.subr.bf16.mxu1 %v705_v40  ;;  %v42_v26 = vand.u32 255, %v40_v19  ;;  %v721_v27 = vpack.c.bf16 %v248_v18, %v240_v17  ;;  %v247_v28 = vld [vmem:[#allocation5 + $0x650] sm:$0xff]  ;;  %v254_v29 = vld [vmem:[#allocation5 + $0x688] sm:$0xff]  ;;  %v256_v31 = vld [vmem:[#allocation5 + $0x698] sm:$0xff]  ;;  %v659_v34 = vpack.c.bf16 %v245_v24, %v237_v23 }
  0x4a   :  { %v262_v30 = vld [vmem:[#allocation5 + $0x6c8] sm:$0xff]  ;;  %v264_v32 = vld [vmem:[#allocation5 + $0x6d8] sm:$0xff]  ;;  %v723_v35 = vpack.c.bf16 %v247_v28, %v239_v25  ;;  %v253_v37 = vld [vmem:[#allocation5 + $0x680] sm:$0xff] }
  0x4b   :  { %644 = vmatpush1.bf16.msra.mxu0 %v643_v46  ;;  %v996_v33 = vcvt.s32.f32 %v42_v26  ;;  %v661_v36 = vpack.c.bf16 %v262_v30, %v254_v29  ;;  %v261_v38 = vld [vmem:[#allocation5 + $0x6c0] sm:$0xff]  ;;  %v255_v39 = vld [vmem:[#allocation5 + $0x690] sm:$0xff]  ;;  %v725_v40 = vpack.c.bf16 %v264_v32, %v256_v31  ;;  %v270_v42 = vld [vmem:[#allocation5 + $0x708] sm:$0xff] }
  0x4c   :  { %708 = vmatpush1.bf16.msra.mxu1 %v707_v47  ;;  %646 = vmatprep.subr.bf16.mxu0 %v645_v48  ;;  %v263_v41 = vld [vmem:[#allocation5 + $0x6d0] sm:$0xff]  ;;  %v278_v43 = vld [vmem:[#allocation5 + $0x748] sm:$0xff]  ;;  %v272_v44 = vld [vmem:[#allocation5 + $0x718] sm:$0xff]  ;;  %v663_v46 = vpack.c.bf16 %v261_v38, %v253_v37 }
  0x4d   :  { %710 = vmatprep.subr.bf16.mxu1 %v709_v52  ;;  %365 = vmatprep.mubr.f32.mxu0 %v996_v33  ;;  %v280_v45 = vld [vmem:[#allocation5 + $0x758] sm:$0xff]  ;;  %v727_v47 = vpack.c.bf16 %v263_v41, %v255_v39  ;;  %v665_v48 = vpack.c.bf16 %v278_v43, %v270_v42  ;;  %v269_v49 = vld [vmem:[#allocation5 + $0x700] sm:$0xff]  ;;  %v271_v51 = vld [vmem:[#allocation5 + $0x710] sm:$0xff] }
  0x4e   :  { %436 = vmatprep.mubr.f32.mxu1 %v996_v33  ;;  %v277_v50 = vld [vmem:[#allocation5 + $0x740] sm:$0xff]  ;;  %v729_v52 = vpack.c.bf16 %v280_v45, %v272_v44  ;;  %v279_v53 = vld [vmem:[#allocation5 + $0x750] sm:$0xff]  ;;  %v286_v54 = vld [vmem:[#allocation5 + $0x788] sm:$0xff] }
  0x4f   :  { %648 = vmatpush1.bf16.msra.mxu0 %v647_v58  ;;  %v294_v55 = vld [vmem:[#allocation5 + $0x7c8] sm:$0xff]  ;;  %v288_v56 = vld [vmem:[#allocation5 + $0x798] sm:$0xff]  ;;  %v39_v58 = vunpack.c.0.s8 %v993_v16  ;;  %v285_v62 = vld [vmem:[#allocation5 + $0x780] sm:$0xff] }
  0x50   :  { %712 = vmatpush1.bf16.msra.mxu1 %v711_v59  ;;  %650 = vmatprep.subr.bf16.mxu0 %v649_v60  ;;  %v296_v57 = vld [vmem:[#allocation5 + $0x7d8] sm:$0xff]  ;;  %v667_v59 = vpack.c.bf16 %v277_v50, %v269_v49  ;;  %v731_v60 = vpack.c.bf16 %v279_v53, %v271_v51  ;;  %v669_v61 = vpack.c.bf16 %v294_v55, %v286_v54  ;;  %v293_v63 = vld [vmem:[#allocation5 + $0x7c0] sm:$0xff]  ;;  %v295_v2 = vld [vmem:[#allocation5 + $0x7d0] sm:$0xff] }
  0x51   :  { %714 = vmatprep.subr.bf16.mxu1 %v713_v0  ;;  %v287_v0 = vld [vmem:[#allocation5 + $0x790] sm:$0xff]  ;;  %v733_v1 = vpack.c.bf16 %v296_v57, %v288_v56  ;;  %v50_v3 = vld [vmem:[#allocation5 + $0x28] sm:$0xff]  ;;  %v41_v5 = vand.u32 255, %v39_v58  ;;  %v60_v7 = vld [vmem:[#allocation5 + $0x78] sm:$0xff] }
  0x52   :  { %v58_v4 = vld [vmem:[#allocation5 + $0x68] sm:$0xff]  ;;  %v49_v11 = vld [vmem:[#allocation5 + $0x20] sm:$0xff]  ;;  %v59_v15 = vld [vmem:[#allocation5 + $0x70] sm:$0xff] }
  0x53   :  { %652 = vmatpush1.bf16.msra.mxu0 %v651_v6  ;;  %v52_v6 = vld [vmem:[#allocation5 + $0x38] sm:$0xff]  ;;  %v737_v10 = vpack.c.bf16 %v58_v4, %v50_v3  ;;  %v57_v12 = vld [vmem:[#allocation5 + $0x60] sm:$0xff]  ;;  %v66_v16 = vld [vmem:[#allocation5 + $0xa8] sm:$0xff]  ;;  %v1001_v18 = vcvt.s32.f32 %v41_v5 }
  0x54   :  { %716 = vmatpush1.bf16.msra.mxu1 %v715_v8  ;;  %654 = vmatprep.subr.bf16.mxu0 %v653_v9  ;;  %v671_v8 = vpack.c.bf16 %v293_v63, %v285_v62  ;;  %v735_v9 = vpack.c.bf16 %v295_v2, %v287_v0  ;;  %v801_v14 = vpack.c.bf16 %v60_v7, %v52_v6  ;;  %v74_v17 = vld [vmem:[#allocation5 + $0xe8] sm:$0xff]  ;;  %v68_v19 = vld [vmem:[#allocation5 + $0xb8] sm:$0xff]  ;;  %v65_v24 = vld [vmem:[#allocation5 + $0xa0] sm:$0xff] }
  0x55   :  { %718 = vmatprep.subr.bf16.mxu1 %v717_v13  ;;  %v51_v13 = vld [vmem:[#allocation5 + $0x30] sm:$0xff]  ;;  %v741_v23 = vpack.c.bf16 %v74_v17, %v66_v16  ;;  %v73_v25 = vld [vmem:[#allocation5 + $0xe0] sm:$0xff]  ;;  %v82_v29 = vld [vmem:[#allocation5 + $0x128] sm:$0xff] }
  0x56   :  { %v67_v26 = vld [vmem:[#allocation5 + $0xb0] sm:$0xff]  ;;  %v90_v30 = vld [vmem:[#allocation5 + $0x168] sm:$0xff]  ;;  %v84_v31 = vld [vmem:[#allocation5 + $0x138] sm:$0xff] }
  0x57   :  { %656 = vmatpush1.bf16.msra.mxu0 %v655_v20  ;;  %v76_v20 = vld [vmem:[#allocation5 + $0xf8] sm:$0xff]  ;;  %v75_v28 = vld [vmem:[#allocation5 + $0xf0] sm:$0xff]  ;;  %v81_v37 = vld [vmem:[#allocation5 + $0x120] sm:$0xff] }
  0x58   :  { %720 = vmatpush1.bf16.msra.mxu1 %v719_v21  ;;  %658 = vmatprep.subr.bf16.mxu0 %v657_v22  ;;  %v739_v21 = vpack.c.bf16 %v57_v12, %v49_v11  ;;  %v803_v22 = vpack.c.bf16 %v59_v15, %v51_v13  ;;  %v92_v32 = vld [vmem:[#allocation5 + $0x178] sm:$0xff]  ;;  %v89_v38 = vld [vmem:[#allocation5 + $0x160] sm:$0xff]  ;;  %v83_v39 = vld [vmem:[#allocation5 + $0x130] sm:$0xff] }
  0x59   :  { %722 = vmatprep.subr.bf16.mxu1 %v721_v27  ;;  %v805_v27 = vpack.c.bf16 %v76_v20, %v68_v19  ;;  %v91_v41 = vld [vmem:[#allocation5 + $0x170] sm:$0xff]  ;;  %v98_v42 = vld [vmem:[#allocation5 + $0x1a8] sm:$0xff]  ;;  %v100_v44 = vld [vmem:[#allocation5 + $0x1b8] sm:$0xff] }
  0x5a   :  { %v106_v43 = vld [vmem:[#allocation5 + $0x1e8] sm:$0xff]  ;;  %v108_v45 = vld [vmem:[#allocation5 + $0x1f8] sm:$0xff]  ;;  %v97_v49 = vld [vmem:[#allocation5 + $0x1a0] sm:$0xff] }
  0x5b   :  { %660 = vmatpush1.bf16.msra.mxu0 %v659_v34  ;;  %v743_v34 = vpack.c.bf16 %v73_v25, %v65_v24  ;;  %v105_v50 = vld [vmem:[#allocation5 + $0x1e0] sm:$0xff]  ;;  %v99_v51 = vld [vmem:[#allocation5 + $0x1b0] sm:$0xff]  ;;  %v114_v54 = vld [vmem:[#allocation5 + $0x228] sm:$0xff] }
  0x5c   :  { %724 = vmatpush1.bf16.msra.mxu1 %v723_v35  ;;  %662 = vmatprep.subr.bf16.mxu0 %v661_v36  ;;  %v807_v35 = vpack.c.bf16 %v75_v28, %v67_v26  ;;  %v745_v36 = vpack.c.bf16 %v90_v30, %v82_v29  ;;  %v107_v53 = vld [vmem:[#allocation5 + $0x1f0] sm:$0xff]  ;;  %v122_v55 = vld [vmem:[#allocation5 + $0x268] sm:$0xff]  ;;  %v116_v56 = vld [vmem:[#allocation5 + $0x238] sm:$0xff]  ;;  %v751_v58 = vpack.c.bf16 %v105_v50, %v97_v49 }
  0x5d   :  { %726 = vmatprep.subr.bf16.mxu1 %v725_v40  ;;  %v809_v40 = vpack.c.bf16 %v92_v32, %v84_v31  ;;  %v124_v57 = vld [vmem:[#allocation5 + $0x278] sm:$0xff]  ;;  %v115_v62 = vld [vmem:[#allocation5 + $0x230] sm:$0xff]  ;;  %v138_v2 = vld [vmem:[#allocation5 + $0x2e8] sm:$0xff] }
  0x5e   :  { %v817_v63 = vpack.c.bf16 %v124_v57, %v116_v56  ;;  %v123_v0 = vld [vmem:[#allocation5 + $0x270] sm:$0xff]  ;;  %v132_v3 = vld [vmem:[#allocation5 + $0x2b8] sm:$0xff]  ;;  %v146_v13 = vld [vmem:[#allocation5 + $0x328] sm:$0xff] }
  0x5f   :  { %664 = vmatpush1.bf16.msra.mxu0 %v663_v46  ;;  %v747_v46 = vpack.c.bf16 %v89_v38, %v81_v37  ;;  %v140_v4 = vld [vmem:[#allocation5 + $0x2f8] sm:$0xff]  ;;  %v819_v6 = vpack.c.bf16 %v123_v0, %v115_v62  ;;  %v139_v12 = vld [vmem:[#allocation5 + $0x2f0] sm:$0xff]  ;;  %v162_v26 = vld [vmem:[#allocation5 + $0x3a8] sm:$0xff] }
  0x60   :  { %728 = vmatpush1.bf16.msra.mxu1 %v727_v47  ;;  %666 = vmatprep.subr.bf16.mxu0 %v665_v48  ;;  %v811_v47 = vpack.c.bf16 %v91_v41, %v83_v39  ;;  %v749_v48 = vpack.c.bf16 %v106_v43, %v98_v42  ;;  %v821_v11 = vpack.c.bf16 %v140_v4, %v132_v3  ;;  %v148_v15 = vld [vmem:[#allocation5 + $0x338] sm:$0xff]  ;;  %v155_v25 = vld [vmem:[#allocation5 + $0x370] sm:$0xff]  ;;  %v178_v39 = vld [vmem:[#allocation5 + $0x428] sm:$0xff] }
  0x61   :  { %730 = vmatprep.subr.bf16.mxu1 %v729_v52  ;;  %v813_v52 = vpack.c.bf16 %v108_v45, %v100_v44  ;;  %v156_v16 = vld [vmem:[#allocation5 + $0x378] sm:$0xff]  ;;  %v171_v38 = vld [vmem:[#allocation5 + $0x3f0] sm:$0xff]  ;;  %v210_v62 = vld [vmem:[#allocation5 + $0x528] sm:$0xff] }
  0x62   :  { %v825_v24 = vpack.c.bf16 %v156_v16, %v148_v15  ;;  %v164_v28 = vld [vmem:[#allocation5 + $0x3b8] sm:$0xff]  ;;  %v187_v50 = vld [vmem:[#allocation5 + $0x470] sm:$0xff] }
  0x63   :  { %668 = vmatpush1.bf16.msra.mxu0 %v667_v59  ;;  %v753_v59 = vpack.c.bf16 %v122_v55, %v114_v54  ;;  %v172_v29 = vld [vmem:[#allocation5 + $0x3f8] sm:$0xff] }
  0x64   :  { %732 = vmatpush1.bf16.msra.mxu1 %v731_v60  ;;  %670 = vmatprep.subr.bf16.mxu0 %v669_v61  ;;  %v113_v60 = vld [vmem:[#allocation5 + $0x220] sm:$0xff]  ;;  %v829_v37 = vpack.c.bf16 %v172_v29, %v164_v28  ;;  %v180_v41 = vld [vmem:[#allocation5 + $0x438] sm:$0xff] }
  0x65   :  { %734 = vmatprep.subr.bf16.mxu1 %v733_v1  ;;  %v121_v61 = vld [vmem:[#allocation5 + $0x260] sm:$0xff]  ;;  %v130_v1 = vld [vmem:[#allocation5 + $0x2a8] sm:$0xff]  ;;  %v188_v42 = vld [vmem:[#allocation5 + $0x478] sm:$0xff] }
  0x66   :  { %v755_v5 = vpack.c.bf16 %v121_v61, %v113_v60  ;;  %v757_v7 = vpack.c.bf16 %v138_v2, %v130_v1  ;;  %v833_v49 = vpack.c.bf16 %v188_v42, %v180_v41  ;;  %v204_v54 = vld [vmem:[#allocation5 + $0x4f8] sm:$0xff]  ;;  %v203_v61 = vld [vmem:[#allocation5 + $0x4f0] sm:$0xff] }
  0x67   :  { %672 = vmatpush1.bf16.msra.mxu0 %v671_v8  ;;  %v129_v8 = vld [vmem:[#allocation5 + $0x2a0] sm:$0xff]  ;;  %v212_v0 = vld [vmem:[#allocation5 + $0x538] sm:$0xff] }
  0x68   :  { %736 = vmatpush1.bf16.msra.mxu1 %v735_v9  ;;  %738 = vmatprep.subr.bf16.mxu0 %v737_v10  ;;  %v137_v9 = vld [vmem:[#allocation5 + $0x2e0] sm:$0xff]  ;;  %v131_v10 = vld [vmem:[#allocation5 + $0x2b0] sm:$0xff]  ;;  %v220_v1 = vld [vmem:[#allocation5 + $0x578] sm:$0xff] }
  0x69   :  { %802 = vmatprep.subr.bf16.mxu1 %v801_v14  ;;  %v154_v14 = vld [vmem:[#allocation5 + $0x368] sm:$0xff]  ;;  %v759_v17 = vpack.c.bf16 %v137_v9, %v129_v8  ;;  %v823_v19 = vpack.c.bf16 %v139_v12, %v131_v10  ;;  %v841_v8 = vpack.c.bf16 %v220_v1, %v212_v0  ;;  %v219_v9 = vld [vmem:[#allocation5 + $0x570] sm:$0xff]  ;;  %v228_v12 = vld [vmem:[#allocation5 + $0x5b8] sm:$0xff] }
  0x6a   :  { %366 = vmatmul.mubr.f32.vlgmr.msra.gmra.mrb[0].mxu0 %v1001_v18  ;;  %v761_v20 = vpack.c.bf16 %v154_v14, %v146_v13  ;;  %v226_v10 = vld [vmem:[#allocation5 + $0x5a8] sm:$0xff]  ;;  %v236_v13 = vld [vmem:[#allocation5 + $0x5f8] sm:$0xff] }
  0x6b   :  { %437 = vmatmul.mubr.f32.vlgmr.msra.gmra.mrb[0].mxu1 %v1001_v18  ;;  %740 = vmatpush1.bf16.msra.mxu0 %v739_v21  ;;  %v145_v21 = vld [vmem:[#allocation5 + $0x320] sm:$0xff] }
  0x6c   :  { %804 = vmatpush1.bf16.msra.mxu1 %v803_v22  ;;  %742 = vmatprep.subr.bf16.mxu0 %v741_v23  ;;  %v153_v22 = vld [vmem:[#allocation5 + $0x360] sm:$0xff]  ;;  %v147_v23 = vld [vmem:[#allocation5 + $0x330] sm:$0xff] }
  0x6d   :  { %806 = vmatprep.subr.bf16.mxu1 %v805_v27  ;;  %507 = vmatprep.mubr.f32.mxu0 %v996_v33  ;;  %v170_v27 = vld [vmem:[#allocation5 + $0x3e8] sm:$0xff]  ;;  %v763_v30 = vpack.c.bf16 %v153_v22, %v145_v21  ;;  %v827_v31 = vpack.c.bf16 %v155_v25, %v147_v23  ;;  %v845_v21 = vpack.c.bf16 %v236_v13, %v228_v12  ;;  %v235_v22 = vld [vmem:[#allocation5 + $0x5f0] sm:$0xff]  ;;  %v244_v25 = vld [vmem:[#allocation5 + $0x638] sm:$0xff] }
  0x6e   :  { %578 = vmatprep.mubr.f32.mxu1 %v996_v33  ;;  %v815_v33 = vpack.c.bf16 %v107_v53, %v99_v51  ;;  %v765_v32 = vpack.c.bf16 %v170_v27, %v162_v26  ;;  %v194_v51 = vld [vmem:[#allocation5 + $0x4a8] sm:$0xff]  ;;  %v196_v53 = vld [vmem:[#allocation5 + $0x4b8] sm:$0xff] }
  0x6f   :  { %744 = vmatpush1.bf16.msra.mxu0 %v743_v34  ;;  %v161_v34 = vld [vmem:[#allocation5 + $0x3a0] sm:$0xff]  ;;  %v837_v60 = vpack.c.bf16 %v204_v54, %v196_v53  ;;  %v242_v23 = vld [vmem:[#allocation5 + $0x628] sm:$0xff]  ;;  %v252_v26 = vld [vmem:[#allocation5 + $0x678] sm:$0xff] }
  0x70   :  { %808 = vmatpush1.bf16.msra.mxu1 %v807_v35  ;;  %746 = vmatprep.subr.bf16.mxu0 %v745_v36  ;;  %v169_v35 = vld [vmem:[#allocation5 + $0x3e0] sm:$0xff]  ;;  %v163_v36 = vld [vmem:[#allocation5 + $0x3b0] sm:$0xff] }
  0x71   :  { %810 = vmatprep.subr.bf16.mxu1 %v809_v40  ;;  %v186_v40 = vld [vmem:[#allocation5 + $0x468] sm:$0xff]  ;;  %v767_v43 = vpack.c.bf16 %v169_v35, %v161_v34  ;;  %v831_v44 = vpack.c.bf16 %v171_v38, %v163_v36  ;;  %v849_v34 = vpack.c.bf16 %v252_v26, %v244_v25  ;;  %v251_v35 = vld [vmem:[#allocation5 + $0x670] sm:$0xff]  ;;  %v260_v38 = vld [vmem:[#allocation5 + $0x6b8] sm:$0xff] }
  0x72   :  { %v769_v45 = vpack.c.bf16 %v186_v40, %v178_v39  ;;  %v258_v36 = vld [vmem:[#allocation5 + $0x6a8] sm:$0xff]  ;;  %v268_v39 = vld [vmem:[#allocation5 + $0x6f8] sm:$0xff] }
  0x73   :  { %748 = vmatpush1.bf16.msra.mxu0 %v747_v46  ;;  %v177_v46 = vld [vmem:[#allocation5 + $0x420] sm:$0xff] }
  0x74   :  { %812 = vmatpush1.bf16.msra.mxu1 %v811_v47  ;;  %750 = vmatprep.subr.bf16.mxu0 %v749_v48  ;;  %v185_v47 = vld [vmem:[#allocation5 + $0x460] sm:$0xff]  ;;  %v179_v48 = vld [vmem:[#allocation5 + $0x430] sm:$0xff] }
  0x75   :  { %814 = vmatprep.subr.bf16.mxu1 %v813_v52  ;;  %v202_v52 = vld [vmem:[#allocation5 + $0x4e8] sm:$0xff]  ;;  %v771_v55 = vpack.c.bf16 %v185_v47, %v177_v46  ;;  %v835_v56 = vpack.c.bf16 %v187_v50, %v179_v48  ;;  %v853_v46 = vpack.c.bf16 %v268_v39, %v260_v38  ;;  %v267_v47 = vld [vmem:[#allocation5 + $0x6f0] sm:$0xff]  ;;  %v276_v50 = vld [vmem:[#allocation5 + $0x738] sm:$0xff] }
  0x76   :  { %v773_v57 = vpack.c.bf16 %v202_v52, %v194_v51  ;;  %v274_v48 = vld [vmem:[#allocation5 + $0x728] sm:$0xff]  ;;  %v284_v51 = vld [vmem:[#allocation5 + $0x778] sm:$0xff] }
  0x77   :  { %752 = vmatpush1.bf16.msra.mxu0 %v751_v58  ;;  %v193_v58 = vld [vmem:[#allocation5 + $0x4a0] sm:$0xff] }
  0x78   :  { %816 = vmatpush1.bf16.msra.mxu1 %v815_v33  ;;  %754 = vmatprep.subr.bf16.mxu0 %v753_v59  ;;  %v201_v33 = vld [vmem:[#allocation5 + $0x4e0] sm:$0xff]  ;;  %v195_v59 = vld [vmem:[#allocation5 + $0x4b0] sm:$0xff] }
  0x79   :  { %818 = vmatprep.subr.bf16.mxu1 %v817_v63  ;;  %v218_v63 = vld [vmem:[#allocation5 + $0x568] sm:$0xff]  ;;  %v775_v2 = vpack.c.bf16 %v201_v33, %v193_v58  ;;  %v839_v3 = vpack.c.bf16 %v203_v61, %v195_v59  ;;  %v857_v58 = vpack.c.bf16 %v284_v51, %v276_v50  ;;  %v283_v33 = vld [vmem:[#allocation5 + $0x770] sm:$0xff]  ;;  %v292_v61 = vld [vmem:[#allocation5 + $0x7b8] sm:$0xff] }
  0x7a   :  { %v777_v4 = vpack.c.bf16 %v218_v63, %v210_v62  ;;  %v290_v59 = vld [vmem:[#allocation5 + $0x7a8] sm:$0xff]  ;;  %v300_v62 = vld [vmem:[#allocation5 + $0x7f8] sm:$0xff] }
  0x7b   :  { %756 = vmatpush1.bf16.msra.mxu0 %v755_v5  ;;  %v209_v5 = vld [vmem:[#allocation5 + $0x520] sm:$0xff] }
  0x7c   :  { %820 = vmatpush1.bf16.msra.mxu1 %v819_v6  ;;  %758 = vmatprep.subr.bf16.mxu0 %v757_v7  ;;  %v217_v6 = vld [vmem:[#allocation5 + $0x560] sm:$0xff]  ;;  %v211_v7 = vld [vmem:[#allocation5 + $0x530] sm:$0xff] }
  0x7d   :  { %822 = vmatprep.subr.bf16.mxu1 %v821_v11  ;;  %v234_v11 = vld [vmem:[#allocation5 + $0x5e8] sm:$0xff]  ;;  %v779_v14 = vpack.c.bf16 %v217_v6, %v209_v5  ;;  %v843_v15 = vpack.c.bf16 %v219_v9, %v211_v7  ;;  %v291_v5 = vld [vmem:[#allocation5 + $0x7b0] sm:$0xff] }
  0x7e   :  { %v781_v16 = vpack.c.bf16 %v234_v11, %v226_v10  ;;  %v299_v6 = vld [vmem:[#allocation5 + $0x7f0] sm:$0xff] }
  0x7f   :  { %760 = vmatpush1.bf16.msra.mxu0 %v759_v17  ;;  %v225_v17 = vld [vmem:[#allocation5 + $0x5a0] sm:$0xff] }
  0x80   :  { %824 = vmatpush1.bf16.msra.mxu1 %v823_v19  ;;  %762 = vmatprep.subr.bf16.mxu0 %v761_v20  ;;  %v233_v19 = vld [vmem:[#allocation5 + $0x5e0] sm:$0xff]  ;;  %v227_v20 = vld [vmem:[#allocation5 + $0x5b0] sm:$0xff] }
  0x81   :  { %826 = vmatprep.subr.bf16.mxu1 %v825_v24  ;;  %v250_v24 = vld [vmem:[#allocation5 + $0x668] sm:$0xff]  ;;  %v783_v27 = vpack.c.bf16 %v233_v19, %v225_v17  ;;  %v847_v28 = vpack.c.bf16 %v235_v22, %v227_v20 }
  0x82   :  { %v785_v29 = vpack.c.bf16 %v250_v24, %v242_v23 }
  0x83   :  { %764 = vmatpush1.bf16.msra.mxu0 %v763_v30  ;;  %v241_v30 = vld [vmem:[#allocation5 + $0x620] sm:$0xff] }
  0x84   :  { %828 = vmatpush1.bf16.msra.mxu1 %v827_v31  ;;  %766 = vmatprep.subr.bf16.mxu0 %v765_v32  ;;  %v249_v31 = vld [vmem:[#allocation5 + $0x660] sm:$0xff]  ;;  %v243_v32 = vld [vmem:[#allocation5 + $0x630] sm:$0xff] }
  0x85   :  { %830 = vmatprep.subr.bf16.mxu1 %v829_v37  ;;  %v266_v37 = vld [vmem:[#allocation5 + $0x6e8] sm:$0xff]  ;;  %v787_v40 = vpack.c.bf16 %v249_v31, %v241_v30  ;;  %v851_v41 = vpack.c.bf16 %v251_v35, %v243_v32 }
  0x86   :  { %v789_v42 = vpack.c.bf16 %v266_v37, %v258_v36 }
  0x87   :  { %768 = vmatpush1.bf16.msra.mxu0 %v767_v43  ;;  %v257_v43 = vld [vmem:[#allocation5 + $0x6a0] sm:$0xff] }
  0x88   :  { %832 = vmatpush1.bf16.msra.mxu1 %v831_v44  ;;  %770 = vmatprep.subr.bf16.mxu0 %v769_v45  ;;  %v265_v44 = vld [vmem:[#allocation5 + $0x6e0] sm:$0xff]  ;;  %v259_v45 = vld [vmem:[#allocation5 + $0x6b0] sm:$0xff] }
  0x89   :  { %834 = vmatprep.subr.bf16.mxu1 %v833_v49  ;;  %v282_v49 = vld [vmem:[#allocation5 + $0x768] sm:$0xff]  ;;  %v791_v52 = vpack.c.bf16 %v265_v44, %v257_v43  ;;  %v855_v53 = vpack.c.bf16 %v267_v47, %v259_v45 }
  0x8a   :  { %v793_v54 = vpack.c.bf16 %v282_v49, %v274_v48 }
  0x8b   :  { %772 = vmatpush1.bf16.msra.mxu0 %v771_v55  ;;  %v273_v55 = vld [vmem:[#allocation5 + $0x720] sm:$0xff] }
  0x8c   :  { %836 = vmatpush1.bf16.msra.mxu1 %v835_v56  ;;  %774 = vmatprep.subr.bf16.mxu0 %v773_v57  ;;  %v281_v56 = vld [vmem:[#allocation5 + $0x760] sm:$0xff]  ;;  %v275_v57 = vld [vmem:[#allocation5 + $0x730] sm:$0xff] }
  0x8d   :  { %838 = vmatprep.subr.bf16.mxu1 %v837_v60  ;;  %v298_v60 = vld [vmem:[#allocation5 + $0x7e8] sm:$0xff]  ;;  %v795_v63 = vpack.c.bf16 %v281_v56, %v273_v55  ;;  %v859_v0 = vpack.c.bf16 %v283_v33, %v275_v57 }
  0x8e   :  { %v797_v1 = vpack.c.bf16 %v298_v60, %v290_v59 }
  0x8f   :  { %776 = vmatpush1.bf16.msra.mxu0 %v775_v2  ;;  %v289_v2 = vld [vmem:[#allocation5 + $0x7a0] sm:$0xff] }
  0x90   :  { %840 = vmatpush1.bf16.msra.mxu1 %v839_v3  ;;  %778 = vmatprep.subr.bf16.mxu0 %v777_v4  ;;  %v297_v3 = vld [vmem:[#allocation5 + $0x7e0] sm:$0xff]  ;;  %v861_v4 = vpack.c.bf16 %v300_v62, %v292_v61 }
  0x91   :  { %842 = vmatprep.subr.bf16.mxu1 %v841_v8  ;;  %v799_v7 = vpack.c.bf16 %v297_v3, %v289_v2  ;;  %v863_v8 = vpack.c.bf16 %v299_v6, %v291_v5 }
  0x93   :  { %780 = vmatpush1.bf16.msra.mxu0 %v779_v14 }
  0x94   :  { %844 = vmatpush1.bf16.msra.mxu1 %v843_v15  ;;  %782 = vmatprep.subr.bf16.mxu0 %v781_v16 }
  0x95   :  { %846 = vmatprep.subr.bf16.mxu1 %v845_v21 }
  0x97   :  { %784 = vmatpush1.bf16.msra.mxu0 %v783_v27 }
  0x98   :  { %848 = vmatpush1.bf16.msra.mxu1 %v847_v28  ;;  %786 = vmatprep.subr.bf16.mxu0 %v785_v29 }
  0x99   :  { %850 = vmatprep.subr.bf16.mxu1 %v849_v34 }
  0x9b   :  { %788 = vmatpush1.bf16.msra.mxu0 %v787_v40 }
  0x9c   :  { %852 = vmatpush1.bf16.msra.mxu1 %v851_v41  ;;  %790 = vmatprep.subr.bf16.mxu0 %v789_v42 }
  0x9d   :  { %854 = vmatprep.subr.bf16.mxu1 %v853_v46 }
  0x9f   :  { %792 = vmatpush1.bf16.msra.mxu0 %v791_v52 }
  0xa0   :  { %856 = vmatpush1.bf16.msra.mxu1 %v855_v53  ;;  %794 = vmatprep.subr.bf16.mxu0 %v793_v54 }
  0xa1   :  { %858 = vmatprep.subr.bf16.mxu1 %v857_v58 }
  0xa3   :  { %796 = vmatpush1.bf16.msra.mxu0 %v795_v63 }
  0xa4   :  { %860 = vmatpush1.bf16.msra.mxu1 %v859_v0  ;;  %798 = vmatprep.subr.bf16.mxu0 %v797_v1 }
  0xa5   :  { %862 = vmatprep.subr.bf16.mxu1 %v861_v4 }
  0xa7   :  { %800 = vmatpush1.bf16.msra.mxu0 %v799_v7 }
  0xa8   :  { %864 = vmatpush1.bf16.msra.mxu1 %v863_v8 }
  0xaa   :  { %508 = vmatmul.mubr.f32.vlgmr.msra.gmra.mrb[2].mxu0 %v1001_v18 }
  0xab   :  { %579 = vmatmul.mubr.f32.vlgmr.msra.gmra.mrb[2].mxu1 %v1001_v18 }
 0x13d   :  { %v367_v9 = vpop.f32.mrb[0].mxu0 }
 0x13e   :  { %585 = vst [vmem:[#allocation7] sm:$0xff] %v367_v9  ;;  %v438_v10 = vpop.f32.mrb[0].mxu1  ;;  %v369_v11 = vpop.f32.mrb[1].mxu0 }
 0x13f   :  { %587 = vst [vmem:[#allocation7 + $0x10] sm:$0xff] %v438_v10  ;;  %586 = vst [vmem:[#allocation7 + $0x8] sm:$0xff] %v369_v11  ;;  %v440_v12 = vpop.f32.mrb[1].mxu1 }
 0x140   :  { %588 = vst [vmem:[#allocation7 + $0x18] sm:$0xff] %v440_v12 }
 0x17d   :  { %v509_v13 = vpop.f32.mrb[2].mxu0 }
 0x17e   :  { %589 = vst [vmem:[#allocation7 + $0x20] sm:$0xff] %v509_v13  ;;  %v580_v14 = vpop.f32.mrb[2].mxu1  ;;  %v511_v15 = vpop.f32.mrb[3].mxu0 }
 0x17f   :  { %591 = vst [vmem:[#allocation7 + $0x30] sm:$0xff] %v580_v14  ;;  %590 = vst [vmem:[#allocation7 + $0x28] sm:$0xff] %v511_v15  ;;  %v582_v16 = vpop.f32.mrb[3].mxu1 }
 0x180   :  { %592 = vst [vmem:[#allocation7 + $0x38] sm:$0xff] %v582_v16 }
 0x181   :  { %925 = shalt.err (!%p922_p6)
}
 0x182   :  { %s926_s10 = scalar_lea.hbm %s1023_s2, 1024 }
 0x183   :  { %p927_p7 = scmp.ne.s32.totalorder %s1023_s2, %s926_s10  ;;  %p930_p8 = scmp.lt.u32.totalorder %s926_s10, %s1023_s2 }
 0x185   :  { %p932_p9 = pnand %p930_p8, %p927_p7 }
 0x187   :  { %935 = shalt.err (!%p932_p9)
}
 0x188   :  { %602 = dma.vmem_to_hbm [thread:$0]  %s600_s6, 1024, %s1023_s2, [#allocation4]  }
 0x189   :  { %940 = dma.done.wait [#allocation4], 1024  }
 0x18a   :  { %941 = vsyncadd [#allocation4], 4294966272 }
 0x18b   :  { %606 = vsyncpa [#allocation3], 1 }
 0x18c   :  { %607 = vsyncpa [#allocation6], 1 }
 0x18d   :  { %608 = vsyncpa [#allocation4], 1 }

</bundles_post_ra>
